<compile_context>
chip_gen: v5e
topology: v5e:2x2
jax: 0.10.0
libtpu: 0.0.40
codegen_flags: <defaults>
</compile_context>

<pallas_src>
import jax
import jax.numpy as jnp
from jax.experimental import pallas as pl
from jax.experimental.pallas import tpu as pltpu


Z_DIM = 8
X_DIM = Z_DIM * Z_DIM   # 64
H_DIM = 32
OUT_LANES = 128         # packed output slab width: 64 (x_recon) + 8 (z) + 56 (pad)


def _round_up(n, m):
    return ((n + m - 1) // m) * m


def _vae_forward_kernel(
    x_ref,      # (TB, 64)  f32
    w1_ref,     # (64, 32)  bf16
    b1_ref,     # (1, 32)   f32
    wmv_ref,    # (32, 16)  bf16   [Wm | Wv]
    bmv_ref,    # (1, 16)   f32    [bm | bv]
    wd_ref,     # (8, 64)   bf16
    bd_ref,     # (1, 64)   f32
    eps_ref,    # (TB, 8)   f32
    out_ref,    # (TB, 128) f32    [x_recon | z | zeros]
):
    x = x_ref[...]
    tb = x.shape[0]

    # Encoder hidden layer: relu(x @ W1 + b1).  bf16 MXU operands, f32 accumulate.
    h = jnp.dot(x.astype(jnp.bfloat16), w1_ref[...],
                preferred_element_type=jnp.float32) + b1_ref[...]
    h = jnp.maximum(h, 0.0)

    # Fused mean / var projection: one (32, 16) matmul, then lane slices.
    mv = jnp.dot(h.astype(jnp.bfloat16), wmv_ref[...],
                 preferred_element_type=jnp.float32) + bmv_ref[...]
    mean = mv[:, 0:Z_DIM]
    var = jnp.logaddexp(mv[:, Z_DIM:2 * Z_DIM], 0.0)   # softplus, numerically stable

    # Reparameterization: z = mean + sqrt(var) * eps   (all f32 elementwise)
    z = mean + jnp.sqrt(var) * eps_ref[...]

    # Decoder: sigmoid(z @ Wd + bd)
    dec = jnp.dot(z.astype(jnp.bfloat16), wd_ref[...],
                  preferred_element_type=jnp.float32) + bd_ref[...]
    x_recon = jax.nn.sigmoid(dec)

    # Lane-dense packed output: one unmasked 128-wide store.
    pad = jnp.zeros((tb, OUT_LANES - X_DIM - Z_DIM), jnp.float32)
    out_ref[...] = jnp.concatenate([x_recon, z, pad], axis=-1)


def deep_generative_forward(x, params, eps, *, tb=None):
    """x: (B, Z_DIM, Z_DIM) float; eps: (B, Z_DIM) float.

    Returns (x_recon (B, Z_DIM, Z_DIM) f32, z (B, Z_DIM) f32).
    """
    B = x.shape[0]
    x_flat = x.reshape(B, X_DIM).astype(jnp.float32)
    eps = eps.astype(jnp.float32)

    # Batch tile: multiple of 8 sublanes; cap at 512 (well inside default scoped
    # VMEM even on v5e -- per step ~TB*(64+8+128)*4 B double-buffered is < 1 MiB).
    if tb is None:
        tb = 512 if B >= 512 else _round_up(B, 8)
    tb = max(8, _round_up(tb, 8))
    b_pad = _round_up(B, tb)
    if b_pad != B:
        x_flat = jnp.pad(x_flat, ((0, b_pad - B), (0, 0)))
        eps = jnp.pad(eps, ((0, b_pad - B), (0, 0)))

    # Fuse the mean/var projection weights: (32, 16) / (1, 16).
    wmv = jnp.concatenate([params["wm"], params["wv"]], axis=1)
    bmv = jnp.concatenate([params["bm"], params["bv"]], axis=1).astype(jnp.float32)

    # bf16 matmul operands (halves weight DMA; MXU-native on v6e/v7x, fine on v5e).
    w1 = params["w1"].astype(jnp.bfloat16)
    wmv = wmv.astype(jnp.bfloat16)
    wd = params["wd"].astype(jnp.bfloat16)
    b1 = params["b1"].astype(jnp.float32)
    bd = params["bd"].astype(jnp.float32)

    grid = (b_pad // tb,)

    def batched(feat):
        # Tiled along batch; block index i along sublanes.
        return pl.BlockSpec((tb, feat), lambda i: (i, 0))

    def resident(shape):
        # Constant block index -> stays resident in VMEM across the grid.
        return pl.BlockSpec(shape, lambda i: (0,) * len(shape))

    out = pl.pallas_call(
        _vae_forward_kernel,
        out_shape=jax.ShapeDtypeStruct((b_pad, OUT_LANES), jnp.float32),
        grid_spec=pltpu.PrefetchScalarGridSpec(
            num_scalar_prefetch=0,
            grid=grid,
            in_specs=[
                batched(X_DIM),                 # x
                resident((X_DIM, H_DIM)),       # w1
                resident((1, H_DIM)),           # b1
                resident((H_DIM, 2 * Z_DIM)),   # wmv
                resident((1, 2 * Z_DIM)),       # bmv
                resident((Z_DIM, X_DIM)),       # wd
                resident((1, X_DIM)),           # bd
                batched(Z_DIM),                 # eps
            ],
            out_specs=batched(OUT_LANES),
        ),
        compiler_params=pltpu.CompilerParams(
            dimension_semantics=("parallel",),  # batch axis -> both TCs on v7x
        ),
    )(x_flat, w1, b1, wmv, bmv, wd, bd, eps)

    x_recon = out[:B, :X_DIM].reshape(B, Z_DIM, Z_DIM)
    z = out[:B, X_DIM:X_DIM + Z_DIM]
    return x_recon, z


def init_params(key):
    """Deterministic init mimicking nn.Linear: U(-1/sqrt(fan_in), 1/sqrt(fan_in)).

    Weights are stored as (in_features, out_features) -- transpose of PyTorch.
    """
    ks = jax.random.split(key, 8)

    def linear(kw, kb, fan_in, fan_out):
        bound = 1.0 / jnp.sqrt(fan_in)
        w = jax.random.uniform(kw, (fan_in, fan_out), jnp.float32, -bound, bound)
        b = jax.random.uniform(kb, (1, fan_out), jnp.float32, -bound, bound)
        return w, b

    w1, b1 = linear(ks[0], ks[1], X_DIM, H_DIM)   # dense_enc1
    wm, bm = linear(ks[2], ks[3], H_DIM, Z_DIM)   # dense_encmean
    wv, bv = linear(ks[4], ks[5], H_DIM, Z_DIM)   # dense_encvar
    wd, bd = linear(ks[6], ks[7], Z_DIM, X_DIM)   # dense_dec1
    return dict(w1=w1, b1=b1, wm=wm, bm=bm, wv=wv, bv=bv, wd=wd, bd=bd)


def reference_forward(x, params, eps):
    """Plain-JAX f32 reference for correctness checking."""
    B = x.shape[0]
    xf = x.reshape(B, X_DIM)
    h = jnp.maximum(xf @ params["w1"] + params["b1"], 0.0)
    mean = h @ params["wm"] + params["bm"]
    var = jax.nn.softplus(h @ params["wv"] + params["bv"])
    z = mean + jnp.sqrt(var) * eps
    xr = jax.nn.sigmoid(z @ params["wd"] + params["bd"])
    return xr.reshape(B, Z_DIM, Z_DIM), z


# TODO(synk): training loop, ELBO losses and the acyclic-graph sampling loop
# (detectCycle) are host-side control flow and out of scope for this forward kernel.


if __name__ == "__main__":
    key = jax.random.PRNGKey(0)
    k_param, k_x, k_eps = jax.random.split(key, 3)

    B = 4
    params = init_params(k_param)
    # Adjacency-matrix-like input in {0, 1}
    x = (jax.random.uniform(k_x, (B, Z_DIM, Z_DIM), jnp.float32) > 0.5).astype(jnp.float32)
    # torch.randn(mean.shape) equivalent: precomputed standard-normal noise
    eps = jax.random.normal(k_eps, (B, Z_DIM), jnp.float32)

    x_recon, z = deep_generative_forward(x, params, eps)
    x_recon = jax.block_until_ready(x_recon)
    z = jax.block_until_ready(z)

    # Sanity check against pure-JAX f32 reference (bf16 matmul operands in the
    # kernel => loosened tolerance).
    xr_ref, z_ref = reference_forward(x, params, eps)
    assert x_recon.shape == (B, Z_DIM, Z_DIM)
    assert z.shape == (B, Z_DIM)
    assert jnp.allclose(x_recon, xr_ref, atol=5e-2, rtol=5e-2), "x_recon mismatch"
    assert jnp.allclose(z, z_ref, atol=5e-2, rtol=5e-2), "z mismatch"

    print("KERNEL_OK")
</pallas_src>

<mosaic_0001>
module attributes {stable_mosaic.version = 11 : i64} {
  func.func @_vae_forward_kernel(%arg0: i32, %arg1: memref<8x64xf32, #tpu.memory_space<vmem>>, %arg2: memref<64x32xbf16, #tpu.memory_space<vmem>>, %arg3: memref<1x32xf32, #tpu.memory_space<vmem>>, %arg4: memref<32x16xbf16, #tpu.memory_space<vmem>>, %arg5: memref<1x16xf32, #tpu.memory_space<vmem>>, %arg6: memref<8x64xbf16, #tpu.memory_space<vmem>>, %arg7: memref<1x64xf32, #tpu.memory_space<vmem>>, %arg8: memref<8x8xf32, #tpu.memory_space<vmem>>, %arg9: memref<8x128xf32, #tpu.memory_space<vmem>>) attributes {dimension_semantics = [#tpu.dimension_semantics<parallel>], iteration_bounds = array<i64: 1>, scalar_prefetch = 0 : i64, scratch_operands = 0 : i64, tpu.core_type = #tpu.core_type<tc>, window_params = [{transform_indices = @transform_0, window_bounds = array<i64: 8, 64>}, {pipeline_mode = #tpu.pipeline_mode<synchronous>, transform_indices = @transform_1, window_bounds = array<i64: 64, 32>}, {pipeline_mode = #tpu.pipeline_mode<synchronous>, transform_indices = @transform_2, window_bounds = array<i64: 1, 32>}, {pipeline_mode = #tpu.pipeline_mode<synchronous>, transform_indices = @transform_3, window_bounds = array<i64: 32, 16>}, {pipeline_mode = #tpu.pipeline_mode<synchronous>, transform_indices = @transform_4, window_bounds = array<i64: 1, 16>}, {pipeline_mode = #tpu.pipeline_mode<synchronous>, transform_indices = @transform_5, window_bounds = array<i64: 8, 64>}, {pipeline_mode = #tpu.pipeline_mode<synchronous>, transform_indices = @transform_6, window_bounds = array<i64: 1, 64>}, {transform_indices = @transform_7, window_bounds = array<i64: 8, 8>}, {transform_indices = @transform_8, window_bounds = array<i64: 8, 128>}]} {
    %c0 = arith.constant 0 : index
    %c0_0 = arith.constant 0 : index
    %0 = vector.load %arg1[%c0, %c0_0] : memref<8x64xf32, #tpu.memory_space<vmem>>, vector<8x64xf32>
    %1 = arith.truncf %0 : vector<8x64xf32> to vector<8x64xbf16>
    %c0_1 = arith.constant 0 : index
    %c0_2 = arith.constant 0 : index
    %2 = vector.load %arg2[%c0_1, %c0_2] : memref<64x32xbf16, #tpu.memory_space<vmem>>, vector<64x32xbf16>
    %cst = arith.constant dense<0.000000e+00> : vector<8x32xf32>
    %3 = tpu.matmul %1, %2, %cst {dimension_numbers = #tpu.dot_dimension_numbers<[1], [0], [0], [1], [0, 0, 1, 1], [], []>} : vector<8x64xbf16>, vector<64x32xbf16>, vector<8x32xf32> -> vector<8x32xf32>
    %c0_3 = arith.constant 0 : index
    %c0_4 = arith.constant 0 : index
    %4 = vector.load %arg3[%c0_3, %c0_4] : memref<1x32xf32, #tpu.memory_space<vmem>>, vector<1x32xf32>
    %5 = vector.broadcast %4 : vector<1x32xf32> to vector<8x32xf32>
    %6 = arith.addf %3, %5 : vector<8x32xf32>
    %cst_5 = arith.constant 0.000000e+00 : f32
    %7 = vector.broadcast %cst_5 : f32 to vector<8x32xf32>
    %8 = arith.maximumf %6, %7 : vector<8x32xf32>
    %9 = arith.truncf %8 : vector<8x32xf32> to vector<8x32xbf16>
    %c0_6 = arith.constant 0 : index
    %c0_7 = arith.constant 0 : index
    %10 = vector.load %arg4[%c0_6, %c0_7] : memref<32x16xbf16, #tpu.memory_space<vmem>>, vector<32x16xbf16>
    %cst_8 = arith.constant dense<0.000000e+00> : vector<8x16xf32>
    %11 = tpu.matmul %9, %10, %cst_8 {dimension_numbers = #tpu.dot_dimension_numbers<[1], [0], [0], [1], [0, 0, 1, 1], [], []>} : vector<8x32xbf16>, vector<32x16xbf16>, vector<8x16xf32> -> vector<8x16xf32>
    %c0_9 = arith.constant 0 : index
    %c0_10 = arith.constant 0 : index
    %12 = vector.load %arg5[%c0_9, %c0_10] : memref<1x16xf32, #tpu.memory_space<vmem>>, vector<1x16xf32>
    %13 = vector.broadcast %12 : vector<1x16xf32> to vector<8x16xf32>
    %14 = arith.addf %11, %13 : vector<8x16xf32>
    %15 = vector.extract_strided_slice %14 {offsets = [0, 0], sizes = [8, 8], strides = [1, 1]} : vector<8x16xf32> to vector<8x8xf32>
    %16 = vector.extract_strided_slice %14 {offsets = [0, 8], sizes = [8, 8], strides = [1, 1]} : vector<8x16xf32> to vector<8x8xf32>
    %cst_11 = arith.constant 0.000000e+00 : f32
    %17 = vector.broadcast %cst_11 : f32 to vector<8x8xf32>
    %18 = arith.maximumf %16, %17 : vector<8x8xf32>
    %19 = vector.broadcast %cst_11 : f32 to vector<8x8xf32>
    %20 = arith.subf %16, %19 : vector<8x8xf32>
    %21 = arith.cmpf one, %20, %20 : vector<8x8xf32>
    %22 = vector.broadcast %cst_11 : f32 to vector<8x8xf32>
    %23 = arith.addf %16, %22 : vector<8x8xf32>
    %24 = math.absf %20 : vector<8x8xf32>
    %cst_12 = arith.constant 0.000000e+00 : f32
    %25 = vector.broadcast %cst_12 : f32 to vector<8x8xf32>
    %26 = arith.subf %25, %24 : vector<8x8xf32>
    %27 = math.exp %26 : vector<8x8xf32>
    %28 = math.log1p %27 : vector<8x8xf32>
    %29 = arith.addf %18, %28 : vector<8x8xf32>
    %30 = arith.select %21, %23, %29 : vector<8x8xi1>, vector<8x8xf32>
    %31 = math.sqrt %30 : vector<8x8xf32>
    %c0_13 = arith.constant 0 : index
    %c0_14 = arith.constant 0 : index
    %32 = vector.load %arg8[%c0_13, %c0_14] : memref<8x8xf32, #tpu.memory_space<vmem>>, vector<8x8xf32>
    %33 = arith.mulf %31, %32 : vector<8x8xf32>
    %34 = arith.addf %15, %33 : vector<8x8xf32>
    %35 = arith.truncf %34 : vector<8x8xf32> to vector<8x8xbf16>
    %c0_15 = arith.constant 0 : index
    %c0_16 = arith.constant 0 : index
    %36 = vector.load %arg6[%c0_15, %c0_16] : memref<8x64xbf16, #tpu.memory_space<vmem>>, vector<8x64xbf16>
    %cst_17 = arith.constant dense<0.000000e+00> : vector<8x64xf32>
    %37 = tpu.matmul %35, %36, %cst_17 {dimension_numbers = #tpu.dot_dimension_numbers<[1], [0], [0], [1], [0, 0, 1, 1], [], []>} : vector<8x8xbf16>, vector<8x64xbf16>, vector<8x64xf32> -> vector<8x64xf32>
    %c0_18 = arith.constant 0 : index
    %c0_19 = arith.constant 0 : index
    %38 = vector.load %arg7[%c0_18, %c0_19] : memref<1x64xf32, #tpu.memory_space<vmem>>, vector<1x64xf32>
    %39 = vector.broadcast %38 : vector<1x64xf32> to vector<8x64xf32>
    %40 = arith.addf %37, %39 : vector<8x64xf32>
    %41 = arith.negf %40 : vector<8x64xf32>
    %42 = math.exp %41 : vector<8x64xf32>
    %cst_20 = arith.constant 1.000000e+00 : f32
    %43 = vector.broadcast %cst_20 : f32 to vector<8x64xf32>
    %44 = arith.addf %43, %42 : vector<8x64xf32>
    %45 = arith.divf %43, %44 : vector<8x64xf32>
    %cst_21 = arith.constant 0.000000e+00 : f32
    %46 = vector.broadcast %cst_21 : f32 to vector<8x56xf32>
    %47 = tpu.concatenate %45, %34, %46 in 1 : vector<8x64xf32>, vector<8x8xf32>, vector<8x56xf32> -> vector<8x128xf32>
    %c0_22 = arith.constant 0 : index
    %c0_23 = arith.constant 0 : index
    %48 = vector.load %arg9[%c0_22, %c0_23] : memref<8x128xf32, #tpu.memory_space<vmem>>, vector<8x128xf32>
    tpu.vector_store %arg9[%c0_22, %c0_23], %47 {strides = array<i32>} : memref<8x128xf32, #tpu.memory_space<vmem>>, vector<8x128xf32>,
    return
  }
  func.func @transform_0(%arg0: i32) -> (i32, i32) {
    %c0_i32 = arith.constant 0 : i32
    %c0_i32_0 = arith.constant 0 : i32
    return %arg0, %c0_i32 : i32, i32
  }
  func.func @transform_1(%arg0: i32) -> (i32, i32) {
    %c0_i32 = arith.constant 0 : i32
    %c0_i32_0 = arith.constant 0 : i32
    %c0_i32_1 = arith.constant 0 : i32
    return %c0_i32, %c0_i32_0 : i32, i32
  }
  func.func @transform_2(%arg0: i32) -> (i32, i32) {
    %c0_i32 = arith.constant 0 : i32
    %c0_i32_0 = arith.constant 0 : i32
    %c0_i32_1 = arith.constant 0 : i32
    return %c0_i32, %c0_i32_0 : i32, i32
  }
  func.func @transform_3(%arg0: i32) -> (i32, i32) {
    %c0_i32 = arith.constant 0 : i32
    %c0_i32_0 = arith.constant 0 : i32
    %c0_i32_1 = arith.constant 0 : i32
    return %c0_i32, %c0_i32_0 : i32, i32
  }
  func.func @transform_4(%arg0: i32) -> (i32, i32) {
    %c0_i32 = arith.constant 0 : i32
    %c0_i32_0 = arith.constant 0 : i32
    %c0_i32_1 = arith.constant 0 : i32
    return %c0_i32, %c0_i32_0 : i32, i32
  }
  func.func @transform_5(%arg0: i32) -> (i32, i32) {
    %c0_i32 = arith.constant 0 : i32
    %c0_i32_0 = arith.constant 0 : i32
    %c0_i32_1 = arith.constant 0 : i32
    return %c0_i32, %c0_i32_0 : i32, i32
  }
  func.func @transform_6(%arg0: i32) -> (i32, i32) {
    %c0_i32 = arith.constant 0 : i32
    %c0_i32_0 = arith.constant 0 : i32
    %c0_i32_1 = arith.constant 0 : i32
    return %c0_i32, %c0_i32_0 : i32, i32
  }
  func.func @transform_7(%arg0: i32) -> (i32, i32) {
    %c0_i32 = arith.constant 0 : i32
    %c0_i32_0 = arith.constant 0 : i32
    return %arg0, %c0_i32 : i32, i32
  }
  func.func @transform_8(%arg0: i32) -> (i32, i32) {
    %c0_i32 = arith.constant 0 : i32
    %c0_i32_0 = arith.constant 0 : i32
    return %arg0, %c0_i32 : i32, i32
  }
}

</mosaic_0001>

<bundles_post_ra>
// kernel: tpu_custom_call.1
= control target key start
LH: loop header
LB: loop body
LE: loop exit
PB: predicated region body
PF: predicated region fallthrough
CT: control target
= control target key end

     0   :  { %s403_s0 = inlined_call_operand.vmem [shape: f32[8,64], index: 0, kind: input, shape index: {}]   ;;  %s404_s1 = inlined_call_operand.vmem [shape: bf16[64,32], index: 1, kind: input, shape index: {}]   ;;  %s405_s2 = inlined_call_operand.vmem [shape: f32[1,32], index: 2, kind: input, shape index: {}]   ;;  %s406_s3 = inlined_call_operand.vmem [shape: bf16[32,16], index: 3, kind: input, shape index: {}]   ;;  %s407_s4 = inlined_call_operand.vmem [shape: f32[1,16], index: 4, kind: input, shape index: {}]   ;;  %s408_s5 = inlined_call_operand.vmem [shape: bf16[8,64], index: 5, kind: input, shape index: {}]   ;;  %s409_s6 = inlined_call_operand.vmem [shape: f32[1,64], index: 6, kind: input, shape index: {}]   ;;  %s410_s7 = inlined_call_operand.vmem [shape: f32[8,8], index: 7, kind: input, shape index: {}]   ;;  %s411_s8 = inlined_call_operand.hbm [shape: f32[8,128], index: 8, kind: output, shape index: {}]  }
   0x1   :  { %v267_v0 = vld [vmem:[%s404_s1 + $0x18] sm:$0xff]  ;;  %v266_v1 = vld [vmem:[%s404_s1 + $0x10] sm:$0xff] }
   0x2   :  { %77 = vmatpush.bf16.msra.mxu0 %v267_v0 }
   0x3   :  { %13 = vsyncpa [#allocation3], 0  ;;  %v265_v2 = vld [vmem:[%s404_s1 + $0x8] sm:$0xff]  ;;  %v264_v3 = vld [vmem:[%s404_s1] sm:$0xff]  ;;  %vm69_vm0 = vcmask 523264   ;;  %vm108_vm1 = vcmask 261120  }
   0x4   :  { %v31_v4 = vld [vmem:[%s403_s0] sm:$0xff]  ;;  %v269_v6 = vld [vmem:[%s406_s3 + $0x8] sm:$0xff]  ;;  %s313_s0 = smov 8   ;;  %vm176_vm6 = vcmask 1043456   ;;  %vm172_vm7 = vcmask 64512   ;;  %s315_s23 = smov 64  }
   0x5   :  { %v32_v5 = vpack.c.bf16 %v31_v4, %v31_v4  ;;  %118 = vmatpush.bf16.msra.mxu1 %v269_v6  ;;  %v268_v7 = vld [vmem:[%s406_s3] sm:$0xff]  ;;  %s227_s28 = sshll.u32 %s411_s8, 4  ;;  %vm217_vm12 = vcmask 588800   ;;  %s228_s28 = int_to_ptr.hbm [resolvable:$true] %s227_s28 }
   0x6   :  { %78 = vmatpush.bf16.msra.mxu0 %v266_v1  ;;  %v155_v8 = vld [vmem:[%s410_s7] sm:$0xff] }
   0x7   :  { %157 = vrot.lane.b32.xlu0 %v155_v8, %s313_s0  ;;  %v274_v9 = vld [vmem:[%s405_s2] ss:$0 sm:$0xff]  ;;  %s314_s2 = smov 120  }
   0x8   :  { %v275_v15 = vld [vmem:[%s407_s4] ss:$0 sm:$0xff] }
   0x9   :  { %119 = vmatpush.bf16.msra.mxu1 %v268_v7  ;;  %v167_v46 = vld [vmem:[%s408_s5] sm:$0xf]  ;;  %s316_s5 = smov [#allocation2]  }
   0xa   :  { %79 = vmatpush.bf16.msra.mxu0 %v265_v2  ;;  %v178_v47 = vsel %vm176_vm6, %v167_v46, 0  ;;  %v276_v51 = vld [vmem:[%s409_s6] ss:$0 sm:$0xff]  ;;  %s225_s6 = sshll.u32 %s316_s5, 4  ;;  %s226_s6 = int_to_ptr.vmem [resolvable:$true] %s225_s6 }
   0xb   :  { %187 = vmatpush.bf16.msra.mxu2 %v178_v47 }
   0xe   :  { %80 = vmatpush.bf16.msra.mxu0 %v264_v3 }
  0x11   :  { %252 = vmatmul.msk.bf16.vlgmr.msra.gmra.mxu0 %vm69_vm0, %v32_v5 }
  0x79   :  { %v158_v41 = vpop.permute.xlu0 %157 }
  0x8e   :  { %v82_v10 = vpop.f32.mrf.mxu0 }
  0x8f   :  { %v83_v11 = vadd.f32 %v274_v9, %v82_v10 }
  0x91   :  { %v86_v12 = vmax.f32 %v83_v11, 0.0 }
  0x93   :  { %v87_v13 = vpack.c.bf16 %v86_v12, %v86_v12 }
  0x95   :  { %261 = vmatmul.msk.bf16.vlgmr.msra.gmra.mxu1 %vm108_vm1, %v87_v13 }
  0x96   :  { %v84_v14 = vpop.f32.mrf.mxu0 }
 0x112   :  { %v121_v16 = vpop.f32.mrf.mxu1 }
 0x113   :  { %v122_v17 = vadd.f32 %v275_v15, %v121_v16 }
 0x115   :  { %v128_v18 = vand.u32 2147483647, %v122_v17  ;;  %v125_v30 = vmax.f32 %v122_v17, 0.0  ;;  %vm126_vm3 = vcmp.ne.f32.partialorder %v122_v17, %v122_v17 }
 0x117   :  { %v129_v19 = vsub.f32 0.0, %v128_v18 }
 0x119   :  { %v130_v20 = vmul.f32 1.442695, %v129_v19 }
 0x11a   :  { %v123_v21 = vpop.f32.mrf.mxu1 }
 0x11b   :  { %277 = vpow2.f32 %v130_v20 }
 0x121   :  { %v278_v22 = vpop.eup %277 }
 0x122   :  { %v132_v23 = vadd.f32 1.0, %v278_v22  ;;  %v135_v24 = vmul.f32 -0.5, %v278_v22  ;;  %v138_v26 = vand.u32 2147483647, %v278_v22 }
 0x124   :  { %279 = vlog2.f32 %v132_v23  ;;  %v136_v25 = vadd.f32 1.0, %v135_v24  ;;  %vm139_vm2 = vcmp.lt.f32.partialorder %v138_v26, 0.0004427343 }
 0x126   :  { %v137_v29 = vmul.f32 %v278_v22, %v136_v25 }
 0x12a   :  { %v280_v27 = vpop.eup %279 }
 0x12b   :  { %v134_v28 = vmul.f32 0.6931472, %v280_v27 }
 0x12d   :  { %v140_v31 = vsel %vm139_vm2, %v137_v29, %v134_v28 }
 0x12e   :  { %v141_v32 = vadd.f32 %v140_v31, %v125_v30 }
 0x130   :  { %v142_v33 = vsel %vm126_vm3, %v122_v17, %v141_v32 }
 0x131   :  { %281 = vrsqrt.f32 %v142_v33  ;;  %vm150_vm4 = vcmp.eq.f32.partialorder %v142_v33, inf  ;;  %v153_v42 = vand.u32 2147483648, %v142_v33  ;;  %vm152_vm5 = vcmp.eq.f32.partialorder %v142_v33, 0.0 }
 0x137   :  { %v282_v34 = vpop.eup %281 }
 0x138   :  { %v144_v35 = vmul.f32 %v282_v34, %v142_v33 }
 0x13a   :  { %v145_v36 = vmul.f32 %v282_v34, %v144_v35 }
 0x13c   :  { %v146_v37 = vmul.f32 0.5, %v145_v36 }
 0x13e   :  { %v147_v38 = vsub.f32 1.5, %v146_v37 }
 0x140   :  { %v148_v39 = vmul.f32 %v282_v34, %v147_v38 }
 0x142   :  { %v149_v40 = vmul.f32 %v148_v39, %v142_v33 }
 0x144   :  { %v151_v43 = vsel %vm150_vm4, %v142_v33, %v149_v40 }
 0x145   :  { %v154_v44 = vsel %vm152_vm5, %v153_v42, %v151_v43 }
 0x146   :  { %v160_v45 = vmul.f32 %v158_v41, %v154_v44 }
 0x148   :  { %162 = vrot.lane.b32.xlu0 %v160_v45, %s314_s2 }
 0x1ba   :  { %v163_v48 = vpop.permute.xlu0 %162 }
 0x1bb   :  { %v165_v49 = vadd.f32 %v163_v48, %v122_v17 }
 0x1bd   :  { %v166_v50 = vpack.c.bf16 %v165_v49, %v165_v49  ;;  %213 = vrot.lane.b32.xlu1 %v165_v49, %s315_s23 }
 0x1bf   :  { %262 = vmatmul.msk.bf16.vlgmr.msra.gmra.mxu2 %vm172_vm7, %v166_v50 }
 0x22f   :  { %v214_v3 = vpop.permute.xlu1 %213 }
 0x242   :  { %v189_v52 = vpop.f32.mrf.mxu2 }
 0x243   :  { %v190_v53 = vadd.f32 %v276_v51, %v189_v52 }
 0x245   :  { %v263_v54 = vmul.f32 -1.442695, %v190_v53 }
 0x247   :  { %283 = vpow2.f32 %v263_v54 }
 0x24a   :  { %v191_v55 = vpop.f32.mrf.mxu2 }
 0x24d   :  { %v284_v56 = vpop.eup %283 }
 0x24e   :  { %v196_v57 = vadd.f32 1.0, %v284_v56 }
 0x250   :  { %285 = vrcp.f32 %v196_v57  ;;  %v208_v61 = vand.u32 2147483648, %v196_v57  ;;  %v206_v63 = vand.u32 2147483647, %v196_v57  ;;  %vm202_vm9 = vweird.f32 %v196_v57 }
 0x252   :  { %v209_v1 = vor.u32 1.1754944e-38, %v208_v61  ;;  %vm207_vm11 = vcmp.eq.f32.partialorder %v206_v63, 8.507059e+37 }
 0x256   :  { %v286_v58 = vpop.eup %285 }
 0x257   :  { %v198_v59 = vmul.f32 %v286_v58, %v196_v57  ;;  %vm203_vm8 = vweird.f32 %v286_v58 }
 0x258   :  { %vm204_vm10 = vmor %vm202_vm9, %vm203_vm8 }
 0x259   :  { %v199_v60 = vsub.f32 1.0, %v198_v59 }
 0x25b   :  { %v200_v62 = vmul.f32 %v286_v58, %v199_v60 }
 0x25d   :  { %v201_v0 = vadd.f32 %v286_v58, %v200_v62 }
 0x25f   :  { %v205_v2 = vsel %vm204_vm10, %v286_v58, %v201_v0 }
 0x260   :  { %v210_v4 = vsel %vm207_vm11, %v209_v1, %v205_v2 }
 0x261   :  { %v216_v5 = vsel %vm69_vm0, %v210_v4, %v214_v3 }
 0x262   :  { %v218_v6 = vsel %vm217_vm12, %v216_v5, 0.0 }
 0x263   :  { %219 = vst [vmem:[#allocation2] sm:$0xff] %v218_v6 }
 0x264   :  { %230 = dma.vmem_to_hbm [thread:$0]  %s226_s6, 128, %s228_s28, [#allocation3]  }
 0x265   :  { %311 = dma.done.wait [#allocation3], 128  }
 0x266   :  { %312 = vsyncadd [#allocation3], 4294967168 }
 0x267   :  { %235 = vsyncpa [#allocation3], 1 }

</bundles_post_ra>
